<compile_context>
chip_gen: v7x
topology: tpu7x:2x2x1
jax: 0.10.0
libtpu: 0.0.40
codegen_flags: <defaults>
</compile_context>

<pallas_src>
import functools

import jax
import jax.numpy as jnp
from jax.experimental import pallas as pl
from jax.experimental.pallas import tpu as pltpu


def _label_smoothing_kernel(x_ref, t_ref, o_ref, acc_ref, *,
                            smoothing, n_rows, block_rows):
    i = pl.program_id(0)

    @pl.when(i == 0)
    def _init():
        acc_ref[...] = jnp.zeros_like(acc_ref)

    x = x_ref[...].astype(jnp.float32)        # (TB, C) f32 internally
    t = t_ref[...]                            # (TB, 1) int32 targets
    tb, n_cls = x.shape

    confidence = 1.0 - smoothing
    smooth_val = smoothing / (n_cls - 1)
    # PyTorch adds smooth_val to every class (including the target), so the
    # total target mass per row is confidence + n_cls * smooth_val.
    tgt_mass = confidence + n_cls * smooth_val

    # Numerically stable log-sum-exp along the class axis (kept in f32).
    m = jnp.max(x, axis=-1, keepdims=True)                               # (TB,1)
    lse = jnp.log(jnp.sum(jnp.exp(x - m), axis=-1, keepdims=True)) + m   # (TB,1)

    # loss_row = -sum(tgt * log_softmax(x)) = tgt_mass*lse - sum(w * x)
    # with w = smooth_val everywhere and smooth_val + confidence on the target.
    # No (TB, C) log_probs / smoothed one-hot temporaries are materialized.
    class_ids = jax.lax.broadcasted_iota(jnp.int32, (tb, n_cls), 1)
    w = jnp.where(class_ids == t, smooth_val + confidence, smooth_val)
    tgt_dot = jnp.sum(w * x, axis=-1, keepdims=True)                     # (TB,1)
    per_row = tgt_mass * lse - tgt_dot                                   # (TB,1)

    # Mask rows of a (possibly partial) last tile so padded rows never pollute
    # the mean (jnp.where also discards NaN/inf from padded garbage rows);
    # divide by the true batch size at finalize.
    row_ids = i * block_rows + jax.lax.broadcasted_iota(jnp.int32, (tb, 1), 0)
    per_row = jnp.where(row_ids < n_rows, per_row, 0.0)

    acc_ref[...] += jnp.sum(per_row, axis=0, keepdims=True)

    @pl.when(i == pl.num_programs(0) - 1)
    def _finalize():
        o_ref[...] = acc_ref[...] * (1.0 / n_rows)


def _choose_block_rows(n_rows, n_cols, itemsize, target_tile_bytes=2 << 20):
    """Pick a sublane-aligned batch tile whose double-buffered copy fits easily
    in scoped VMEM on all generations (incl. v7x's 64 MiB physical)."""
    rows = max(1, target_tile_bytes // max(1, n_cols * itemsize))
    if rows >= n_rows:
        return n_rows                      # single exact block: always legal
    rows = max(8, (rows // 8) * 8)         # multiple of 8 sublanes
    return min(rows, n_rows)


def label_smoothing_loss(inputs, targets, smoothing=0.1, *,
                         block_rows=None, vmem_limit_bytes=None):
    """inputs: (B, C) float logits (f32 or bf16), targets: (B,) ints -> scalar f32."""
    n_rows, n_cols = inputs.shape
    targets2d = targets.astype(jnp.int32).reshape(n_rows, 1)

    if block_rows is None:
        block_rows = _choose_block_rows(
            n_rows, n_cols, jnp.dtype(inputs.dtype).itemsize)
    num_tiles = pl.cdiv(n_rows, block_rows)

    kernel = functools.partial(
        _label_smoothing_kernel,
        smoothing=float(smoothing), n_rows=n_rows, block_rows=block_rows)

    out = pl.pallas_call(
        kernel,
        out_shape=jax.ShapeDtypeStruct((1, 1), jnp.float32),
        grid_spec=pltpu.PrefetchScalarGridSpec(
            num_scalar_prefetch=0,
            grid=(num_tiles,),
            in_specs=[
                pl.BlockSpec((block_rows, n_cols), lambda i: (i, 0)),
                pl.BlockSpec((block_rows, 1), lambda i: (i, 0)),
            ],
            out_specs=pl.BlockSpec((1, 1), lambda i: (0, 0)),
            scratch_shapes=[pltpu.VMEM((1, 1), jnp.float32)],
        ),
        compiler_params=pltpu.CompilerParams(
            dimension_semantics=("arbitrary",),
            vmem_limit_bytes=vmem_limit_bytes),
    )(inputs, targets2d)
    return out[0, 0]


def _reference(inputs, targets, smoothing=0.1):
    # Pure-JAX reference mirroring the PyTorch module.
    confidence = 1.0 - smoothing
    log_probs = jax.nn.log_softmax(inputs.astype(jnp.float32), axis=-1)
    n_cls = inputs.shape[-1]
    tgt = jax.nn.one_hot(targets, n_cls, dtype=jnp.float32) * confidence
    tgt = tgt + smoothing / (n_cls - 1)
    return jnp.mean(jnp.sum(-tgt * log_probs, axis=-1))


if __name__ == "__main__":
    key = jax.random.PRNGKey(0)
    k1, k2, k3, k4 = jax.random.split(key, 4)

    # Primary small case: (batch, num_classes) = (8, 32), single exact tile.
    B, C = 8, 32
    x = jax.random.normal(k1, (B, C), dtype=jnp.float32)
    t = jax.random.randint(k2, (B,), 0, C, dtype=jnp.int32)
    loss = jax.block_until_ready(label_smoothing_loss(x, t, smoothing=0.1))
    ref = _reference(x, t, smoothing=0.1)
    assert jnp.allclose(loss, ref, atol=1e-5, rtol=1e-5), (loss, ref)

    # Non-divisible batch exercises the tiled/accumulator path with a partial
    # last tile (grid=2, padded rows masked, mean divided by the true B).
    B2, C2 = 12, 160
    x2 = jax.random.normal(k3, (B2, C2), dtype=jnp.float32)
    t2 = jax.random.randint(k4, (B2,), 0, C2, dtype=jnp.int32)
    loss2 = jax.block_until_ready(
        label_smoothing_loss(x2, t2, smoothing=0.1, block_rows=8))
    ref2 = _reference(x2, t2, smoothing=0.1)
    assert jnp.allclose(loss2, ref2, atol=1e-5, rtol=1e-5), (loss2, ref2)

    # bf16 logits path (in-kernel f32 cast); looser tolerance for bf16 inputs.
    x3 = x.astype(jnp.bfloat16)
    loss3 = jax.block_until_ready(label_smoothing_loss(x3, t, smoothing=0.1))
    ref3 = _reference(x3, t, smoothing=0.1)
    assert jnp.allclose(loss3, ref3, atol=1e-3, rtol=1e-3), (loss3, ref3)

    print("KERNEL_OK")
</pallas_src>

<mosaic_0001>
module attributes {stable_mosaic.version = 11 : i64} {
  func.func @_label_smoothing_kernel(%arg0: i32, %arg1: memref<8x32xf32, #tpu.memory_space<vmem>>, %arg2: memref<8x1xi32, #tpu.memory_space<vmem>>, %arg3: memref<1x1xf32, #tpu.memory_space<vmem>>, %arg4: memref<1x1xf32, #tpu.memory_space<vmem>>) attributes {dimension_semantics = [#tpu.dimension_semantics<arbitrary>], iteration_bounds = array<i64: 1>, scalar_prefetch = 0 : i64, scratch_operands = 1 : i64, tpu.core_type = #tpu.core_type<tc>, window_params = [{transform_indices = @transform_0, window_bounds = array<i64: 8, 32>}, {transform_indices = @transform_1, window_bounds = array<i64: 8, 1>}, {pipeline_mode = #tpu.pipeline_mode<synchronous>, transform_indices = @transform_2, window_bounds = array<i64: 1, 1>}]} {
    %c0_i32 = arith.constant 0 : i32
    %0 = arith.cmpi eq, %arg0, %c0_i32 : i32
    %1 = arith.extui %0 : i1 to i32
    %c0_i32_0 = arith.constant 0 : i32
    %2 = arith.cmpi ne, %1, %c0_i32_0 : i32
    scf.if %2 {
      %cst_18 = arith.constant 0.000000e+00 : f32
      %42 = vector.broadcast %cst_18 : f32 to vector<1x1xf32>
      %c0_19 = arith.constant 0 : index
      %c0_20 = arith.constant 0 : index
      %43 = vector.load %arg4[%c0_19, %c0_20] : memref<1x1xf32, #tpu.memory_space<vmem>>, vector<1x1xf32>
      tpu.vector_store %arg4[%c0_19, %c0_20], %42 {strides = array<i32>} : memref<1x1xf32, #tpu.memory_space<vmem>>, vector<1x1xf32>,
    } else {
    }
    %c0 = arith.constant 0 : index
    %c0_1 = arith.constant 0 : index
    %3 = vector.load %arg1[%c0, %c0_1] : memref<8x32xf32, #tpu.memory_space<vmem>>, vector<8x32xf32>
    %c0_2 = arith.constant 0 : index
    %c0_3 = arith.constant 0 : index
    %4 = vector.load %arg2[%c0_2, %c0_3] : memref<8x1xi32, #tpu.memory_space<vmem>>, vector<8x1xi32>
    %cst = arith.constant dense<0xFF800000> : vector<8xf32>
    %5 = vector.multi_reduction <maximumf>, %3, %cst [1] : vector<8x32xf32> to vector<8xf32>
    %6 = vector.shape_cast %5 : vector<8xf32> to vector<8x1xf32>
    %7 = vector.broadcast %6 : vector<8x1xf32> to vector<8x32xf32>
    %8 = arith.subf %3, %7 : vector<8x32xf32>
    %9 = math.exp %8 : vector<8x32xf32>
    %cst_4 = arith.constant dense<0.000000e+00> : vector<8xf32>
    %10 = vector.multi_reduction <add>, %9, %cst_4 [1] : vector<8x32xf32> to vector<8xf32>
    %11 = vector.shape_cast %10 : vector<8xf32> to vector<8x1xf32>
    %12 = math.log %11 : vector<8x1xf32>
    %13 = arith.addf %12, %6 : vector<8x1xf32>
    %14 = tpu.iota {dimensions = array<i32: 1>} : vector<8x32xi32>
    %15 = vector.broadcast %4 : vector<8x1xi32> to vector<8x32xi32>
    %16 = arith.cmpi eq, %14, %15 : vector<8x32xi32>
    %cst_5 = arith.constant 0.903225779 : f32
    %cst_6 = arith.constant 0.0032258064 : f32
    %17 = vector.broadcast %cst_5 : f32 to vector<8x32xf32>
    %18 = vector.broadcast %cst_6 : f32 to vector<8x32xf32>
    %19 = arith.select %16, %17, %18 : vector<8x32xi1>, vector<8x32xf32>
    %20 = arith.mulf %19, %3 : vector<8x32xf32>
    %cst_7 = arith.constant dense<0.000000e+00> : vector<8xf32>
    %21 = vector.multi_reduction <add>, %20, %cst_7 [1] : vector<8x32xf32> to vector<8xf32>
    %22 = vector.shape_cast %21 : vector<8xf32> to vector<8x1xf32>
    %cst_8 = arith.constant 1.0032258 : f32
    %23 = vector.broadcast %cst_8 : f32 to vector<8x1xf32>
    %24 = arith.mulf %23, %13 : vector<8x1xf32>
    %25 = arith.subf %24, %22 : vector<8x1xf32>
    %c8_i32 = arith.constant 8 : i32
    %26 = arith.muli %arg0, %c8_i32 : i32
    %27 = tpu.iota {dimensions = array<i32: 0>} : vector<8x1xi32>
    %28 = vector.broadcast %26 : i32 to vector<8x1xi32>
    %29 = arith.addi %28, %27 : vector<8x1xi32>
    %c8_i32_9 = arith.constant 8 : i32
    %30 = vector.broadcast %c8_i32_9 : i32 to vector<8x1xi32>
    %31 = arith.cmpi slt, %29, %30 : vector<8x1xi32>
    %cst_10 = arith.constant 0.000000e+00 : f32
    %32 = vector.broadcast %cst_10 : f32 to vector<8x1xf32>
    %33 = arith.select %31, %25, %32 : vector<8x1xi1>, vector<8x1xf32>
    %c0_11 = arith.constant 0 : index
    %c0_12 = arith.constant 0 : index
    %34 = vector.load %arg4[%c0_11, %c0_12] : memref<1x1xf32, #tpu.memory_space<vmem>>, vector<1x1xf32>
    %cst_13 = arith.constant dense<0.000000e+00> : vector<1xf32>
    %35 = vector.multi_reduction <add>, %33, %cst_13 [0] : vector<8x1xf32> to vector<1xf32>
    %36 = vector.shape_cast %35 : vector<1xf32> to vector<1x1xf32>
    %37 = arith.addf %34, %36 : vector<1x1xf32>
    %c0_14 = arith.constant 0 : index
    %c0_15 = arith.constant 0 : index
    %38 = vector.load %arg4[%c0_14, %c0_15] : memref<1x1xf32, #tpu.memory_space<vmem>>, vector<1x1xf32>
    tpu.vector_store %arg4[%c0_14, %c0_15], %37 {strides = array<i32>} : memref<1x1xf32, #tpu.memory_space<vmem>>, vector<1x1xf32>,
    %c0_i32_16 = arith.constant 0 : i32
    %39 = arith.cmpi eq, %arg0, %c0_i32_16 : i32
    %40 = arith.extui %39 : i1 to i32
    %c0_i32_17 = arith.constant 0 : i32
    %41 = arith.cmpi ne, %40, %c0_i32_17 : i32
    scf.if %41 {
      %c0_18 = arith.constant 0 : index
      %c0_19 = arith.constant 0 : index
      %42 = vector.load %arg4[%c0_18, %c0_19] : memref<1x1xf32, #tpu.memory_space<vmem>>, vector<1x1xf32>
      %cst_20 = arith.constant 1.250000e-01 : f32
      %43 = vector.broadcast %cst_20 : f32 to vector<1x1xf32>
      %44 = arith.mulf %42, %43 : vector<1x1xf32>
      %c0_21 = arith.constant 0 : index
      %c0_22 = arith.constant 0 : index
      %45 = vector.load %arg3[%c0_21, %c0_22] : memref<1x1xf32, #tpu.memory_space<vmem>>, vector<1x1xf32>
      tpu.vector_store %arg3[%c0_21, %c0_22], %44 {strides = array<i32>} : memref<1x1xf32, #tpu.memory_space<vmem>>, vector<1x1xf32>,
    } else {
    }
    return
  }
  func.func @transform_0(%arg0: i32) -> (i32, i32) {
    %c0_i32 = arith.constant 0 : i32
    %c0_i32_0 = arith.constant 0 : i32
    return %arg0, %c0_i32 : i32, i32
  }
  func.func @transform_1(%arg0: i32) -> (i32, i32) {
    %c0_i32 = arith.constant 0 : i32
    %c0_i32_0 = arith.constant 0 : i32
    return %arg0, %c0_i32 : i32, i32
  }
  func.func @transform_2(%arg0: i32) -> (i32, i32) {
    %c0_i32 = arith.constant 0 : i32
    %c0_i32_0 = arith.constant 0 : i32
    %c0_i32_1 = arith.constant 0 : i32
    return %c0_i32, %c0_i32_0 : i32, i32
  }
}

</mosaic_0001>

<bundles_post_ra>
// kernel: tpu_custom_call.1
= control target key start
LH: loop header
LB: loop body
LE: loop exit
PB: predicated region body
PF: predicated region fallthrough
CT: control target
= control target key end

     0   :  { %vm20_vm0 = vcmask 261120   ;;  %s159_s0 = inlined_call_operand.vmem [shape: f32[8,32], index: 0, kind: input, shape index: {}]   ;;  %s160_s1 = inlined_call_operand.vmem [shape: s32[8,1], index: 1, kind: input, shape index: {}]   ;;  %s161_s2 = inlined_call_operand.hbm [shape: f32[1,1], index: 2, kind: output, shape index: {}]  }
   0x1   :  { %v18_v0 = vld [vmem:[%s159_s0] sm:$0xff] }
   0x2   :  { %7 = vsyncpa [#allocation4], 0  ;;  %v21_v1 = vsel %vm20_vm0, %v18_v0, -inf  ;;  %v116_v2 = vmov 0   ;;  %v19_v3 = vld [vmem:[%s160_s1] sm:$0xff]  ;;  %v33_v6 = vlaneseq  ;;  %vm16_vm2 = vcmask 0  }
   0x3   :  { %87 = vset.pattern.permute.xlu0 %v116_v2  ;;  %v117_v10 = vmov 0.0032258064   ;;  %v118_v16 = vmov 0.0   ;;  %s119_s0 = smov [#allocation3]  }
   0x4   :  { %22 = vmax.xlane.f32.xlu0 %v21_v1  ;;  %v34_v8 = vand.u32 127, %v33_v6  ;;  %17 = vst.msk [vmem:[#allocation2] sm:$0x1] %vm16_vm2, %v118_v16  ;;  %s75_s1 = sshll.u32 %s119_s0, 4  ;;  %s76_s1 = int_to_ptr.vmem [resolvable:$true] %s75_s1 }
   0x5   :  { %s92_s13 = scalar_lea.vmem %s76_s1, 16  ;;  %s96_s14 = scalar_lea.vmem %s76_s1, 32 }
   0x6   :  { %p93_p0 = scmp.ne.s32.totalorder %s76_s1, %s92_s13  ;;  %p97_p1 = scmp.lt.s32.totalorder %s76_s1, %s76_s1 }
   0x7   :  { %p98_p2 = scmp.lt.s32.totalorder %s96_s14, %s92_s13 }
   0x9   :  { %p99_p3 = por %p98_p2, %p97_p1 }
   0xb   :  { %v53_v29 = vld [vmem:[#allocation2] sm:$0x1]  ;;  %p100_p4 = pnand %p99_p3, %p93_p0 }
  0x1a   :  { %36 = vperm.xlu0 %87, %v19_v3  }
  0x91   :  { %v23_v4 = vpop.xlane.xlu0 %22 }
  0x92   :  { %v24_v5 = vsub.f32 %v18_v0, %v23_v4 }
  0x94   :  { %v25_v7 = vmul.f32 1.442695, %v24_v5 }
  0x96   :  { %88 = vpow2.f32 %v25_v7 }
  0x99   :  { %v37_v9 = vpop.permute.xlu0 %36 }
  0x9a   :  { %vm38_vm1 = vcmp.eq.s32.totalorder %v34_v8, %v37_v9 }
  0x9b   :  { %v39_v11 = vsel %vm38_vm1, 0.9032258, %v117_v10 }
  0x9c   :  { %v40_v12 = vmul.f32 %v39_v11, %v18_v0 }
  0x9e   :  { %v41_v15 = vsel %vm20_vm0, %v40_v12, 0.0 }
  0xa0   :  { %v89_v13 = vpop.eup %88 }
  0xa1   :  { %v27_v14 = vsel %vm20_vm0, %v89_v13, 0.0 }
  0xa2   :  { %28 = vadd.xlane.f32.xlu1 %v27_v14 }
  0xa6   :  { %42 = vadd.xlane.f32.xlu1 %v41_v15 }
 0x12f   :  { %v29_v17 = vpop.xlane.xlu1 %28 }
 0x130   :  { %90 = vlog2.f32 %v29_v17 }
 0x133   :  { %v43_v21 = vpop.xlane.xlu1 %42 }
 0x13a   :  { %v91_v18 = vpop.eup %90 }
 0x13b   :  { %v31_v19 = vmul.f32 0.6931472, %v91_v18 }
 0x13d   :  { %v32_v20 = vadd.f32 %v31_v19, %v23_v4 }
 0x13f   :  { %v44_v22 = vmul.f32 1.0032258, %v32_v20 }
 0x141   :  { %v45_v23 = vsub.f32 %v44_v22, %v43_v21 }
 0x143   :  { %v54_v24 = vrot.slane %v45_v23, 4 }
 0x145   :  { %v55_v25 = vadd.f32 %v54_v24, %v45_v23 }
 0x147   :  { %v56_v26 = vrot.slane %v55_v25, 2 }
 0x149   :  { %v57_v27 = vadd.f32 %v56_v26, %v55_v25 }
 0x14b   :  { %v58_v28 = vrot.slane %v57_v27, 1 }
 0x14d   :  { %v59_v30 = vadd.f32 %v58_v28, %v57_v27 }
 0x14f   :  { %v60_v31 = vadd.f32 %v59_v30, %v53_v29 }
 0x151   :  { %62 = vst.msk [vmem:[#allocation2] sm:$0x1] %vm16_vm2, %v60_v31 }
 0x158   :  { %v66_v32 = vld [vmem:[#allocation2] sm:$0x1] }
 0x159   :  { %v67_v33 = vmul.f32 0.125, %v66_v32 }
 0x15b   :  { %68 = vst.msk [vmem:[#allocation3] sm:$0x1] %vm16_vm2, %v67_v33 }
 0x15c   :  { %103 = shalt.err (!%p100_p4)
}
 0x15d   :  { %s104_s17 = scalar_lea.hbm %s161_s2, 16 }
 0x15e   :  { %p105_p5 = scmp.ne.s32.totalorder %s161_s2, %s104_s17  ;;  %p108_p6 = scmp.lt.u32.totalorder %s104_s17, %s161_s2 }
 0x160   :  { %p110_p7 = pnand %p108_p6, %p105_p5 }
 0x162   :  { %113 = shalt.err (!%p110_p7)
}
 0x163   :  { %78 = dma.vmem_to_hbm [thread:$0]  %s76_s1, 16, %s161_s2, [#allocation4]  }
 0x164   :  { %114 = dma.done.wait [#allocation4], 16  }
 0x165   :  { %115 = vsyncadd [#allocation4], 4294967280 }
 0x166   :  { %82 = vsyncpa [#allocation4], 1 }

</bundles_post_ra>
